<compile_context>
chip_gen: v7x
topology: tpu7x:2x2x1
jax: 0.10.0
libtpu: 0.0.40
codegen_flags: <defaults>
</compile_context>

<pallas_src>
import functools

import jax
import jax.numpy as jnp
from jax import lax
from jax.experimental import pallas as pl
from jax.experimental.pallas import tpu as pltpu


def _bf16(x):
    return x.astype(jnp.bfloat16)


# --------------------- fused GCN + label-wise attention kernel ---------------------
def bertla_fused_kernel(a_ref, a_lab_ref, gx_ref, lab_ref,
                        w1_ref, b1_ref, w2_ref, b2_ref,
                        text_ref, wl_ref, bl_ref,
                        wt_lab_ref, bt_lab_ref, wt_gcn_ref, bt_gcn_ref,
                        o_ref, *, batch, seq):
    f32 = jnp.float32

    # ---- GCN layer 1 over all nodes: relu(A_norm @ (X @ W1) + b1).
    #      F.dropout(p=0.2, training=False) is the identity in eval mode.
    h = jnp.dot(_bf16(gx_ref[...]), _bf16(w1_ref[...]), preferred_element_type=f32)
    h = jnp.dot(_bf16(a_ref[...]), _bf16(h), preferred_element_type=f32) + b1_ref[...]
    h = jnp.maximum(h, 0.0)                                             # (N, Ghid)

    # ---- GCN layer 2, label rows only: relu(A_norm[start:, :] @ (h @ W2) + b2).
    h2 = jnp.dot(_bf16(h), _bf16(w2_ref[...]), preferred_element_type=f32)
    graph_feat = jnp.maximum(
        jnp.dot(_bf16(a_lab_ref[...]), _bf16(h2), preferred_element_type=f32)
        + b2_ref[...], 0.0)                                             # (L, Gout)

    lab_feat = lab_ref[...]                                             # (L, Dlab) f32
    lab_bf = _bf16(lab_feat)

    # ---- label-wise attention: tanh(text @ W_l + b_l) over the whole batch at once.
    text_bf = _bf16(text_ref[...])                                      # (B*S, H)
    w_all = jnp.tanh(jnp.dot(text_bf, _bf16(wl_ref[...]),
                             preferred_element_type=f32) + bl_ref[...])  # (B*S, Dlab) f32

    wt_lab = _bf16(wt_lab_ref[...])                                     # (H, Dlab)
    wt_gcn = _bf16(wt_gcn_ref[...])                                     # (H, Gout)
    bt_lab = bt_lab_ref[...]                                            # (1, Dlab)
    bt_gcn = bt_gcn_ref[...]                                            # (1, Gout)

    rows = []
    for b in range(batch):                                              # B is a small constant
        w_b = _bf16(w_all[b * seq:(b + 1) * seq, :])                    # (S, Dlab) aligned slice
        t_b = text_bf[b * seq:(b + 1) * seq, :]                         # (S, H)    aligned slice
        # scores[l, s] = <label_feat[l], w[b, s]>
        scores = lax.dot_general(lab_bf, w_b, (((1,), (1,)), ((), ())),
                                 preferred_element_type=f32)            # (L, S)
        # torch nn.Softmax(dim=1) on (b, L, S): softmax over the label axis (axis 0 here).
        e = jnp.exp(scores - jnp.max(scores, axis=0, keepdims=True))
        inv_denom = pl.reciprocal(jnp.sum(e, axis=0, keepdims=True), approx=True)
        weights = e * inv_denom                                         # (L, S) f32

        attn = jnp.dot(_bf16(weights), t_b, preferred_element_type=f32)  # (L, H)
        attn_bf = _bf16(attn)
        # text_out_transform, split into the label-embed half and the gcn-out half so the
        # torch cat(initial_graph_feat, graph_feat) never materializes.
        t1 = jnp.maximum(jnp.dot(attn_bf, wt_lab, preferred_element_type=f32) + bt_lab, 0.0)
        t2 = jnp.maximum(jnp.dot(attn_bf, wt_gcn, preferred_element_type=f32) + bt_gcn, 0.0)
        out_b = (jnp.sum(t1 * lab_feat, axis=-1)
                 + jnp.sum(t2 * graph_feat, axis=-1))                   # (L,)
        rows.append(out_b[None, :])                                     # (1, L)
    o_ref[...] = jnp.concatenate(rows, axis=0)                          # single (B, L) store


def bertla_forward(a_norm, gx, gcn_w1, gcn_b1, gcn_w2, gcn_b2,
                   text_feats, w_l, b_l, w_t, b_t, *, start):
    B, S, H = text_feats.shape
    L = gx.shape[0] - start
    d_lab = gx.shape[1]

    # Host-side (free XLA) slices/reshapes so the kernel only sees aligned full-array blocks.
    text2d = text_feats.reshape(B * S, H)
    a_lab = a_norm[start:, :]                 # (L, N)   label rows of the normalized adjacency
    lab_feat = gx[start:, :]                  # (L, Dlab) initial_graph_feat
    w_t_lab, w_t_gcn = w_t[:, :d_lab], w_t[:, d_lab:]
    b_t_lab, b_t_gcn = b_t[:, :d_lab], b_t[:, d_lab:]

    kernel = functools.partial(bertla_fused_kernel, batch=B, seq=S)
    vmem = lambda: pl.BlockSpec(memory_space=pltpu.MemorySpace.VMEM)
    return pl.pallas_call(
        kernel,
        out_shape=jax.ShapeDtypeStruct((B, L), jnp.float32),
        in_specs=[vmem() for _ in range(15)],
        out_specs=vmem(),
    )(a_norm, a_lab, gx, lab_feat, gcn_w1, gcn_b1, gcn_w2, gcn_b2,
      text2d, w_l, b_l, w_t_lab, b_t_lab, w_t_gcn, b_t_gcn)


if __name__ == "__main__":
    key = jax.random.PRNGKey(0)

    # small, forward-consistent shapes
    B, S, H = 2, 16, 32            # batch, seq (window_size = 1), hidden_size
    V = 64                         # vocab size for the synthetic encoder
    label_embed_dim = 16           # config.BERTLA.label_embed_dim == gcn_in_features
    gcn_hidden = 16                # config.BERTLA.gcn_hidden_features
    gcn_out = 16                   # config.BERTLA.gcn_out_features
    D_out = label_embed_dim + gcn_out
    n_hier = 3                     # len(hier2label)
    start = n_hier + 1
    L = 8                          # number of labels
    N_nodes = start + L            # hierarchy nodes + label nodes

    keys = jax.random.split(key, 12)
    # deterministic synthetic parameters
    embed = jax.random.normal(keys[0], (V, H), jnp.float32) * 0.1
    gcn_w1 = jax.random.normal(keys[1], (label_embed_dim, gcn_hidden), jnp.float32) * 0.3
    gcn_b1 = jax.random.normal(keys[2], (1, gcn_hidden), jnp.float32) * 0.1
    gcn_w2 = jax.random.normal(keys[3], (gcn_hidden, gcn_out), jnp.float32) * 0.3
    gcn_b2 = jax.random.normal(keys[4], (1, gcn_out), jnp.float32) * 0.1
    w_l = jax.random.normal(keys[5], (H, label_embed_dim), jnp.float32) * 0.2
    b_l = jax.random.normal(keys[6], (1, label_embed_dim), jnp.float32) * 0.1
    w_t = jax.random.normal(keys[7], (H, D_out), jnp.float32) * 0.2
    b_t = jax.random.normal(keys[8], (1, D_out), jnp.float32) * 0.1

    # graph data G = (x, edge_index, edge_attr): a simple ring graph
    gx = jax.random.normal(keys[9], (N_nodes, label_embed_dim), jnp.float32)
    src = jnp.arange(N_nodes)
    dst = (src + 1) % N_nodes
    edge_index = jnp.stack([jnp.concatenate([src, dst]), jnp.concatenate([dst, src])])
    edge_weight = jnp.ones((edge_index.shape[1],), jnp.float32)

    # text inputs
    ids = jax.random.randint(keys[10], (B, S), 0, V)
    mask = jnp.ones((B, S), jnp.float32)

    # ---- glue: GCNConv symmetric normalization of (A + I) ----
    A = jnp.zeros((N_nodes, N_nodes), jnp.float32)
    A = A.at[edge_index[0], edge_index[1]].add(edge_weight)
    A = A + jnp.eye(N_nodes, dtype=jnp.float32)
    deg = jnp.sum(A, axis=1)
    dinv = jnp.where(deg > 0, 1.0 / jnp.sqrt(deg), 0.0)
    A_norm = A * dinv[:, None] * dinv[None, :]

    # ---- glue: synthetic text encoder ----
    # TODO(synk): pretrained HuggingFace textEncoder (AutoModel) has no clean Pallas
    # equivalent; using a deterministic embedding-lookup encoder masked by attention mask.
    text_feats = embed[ids] * mask[:, :, None]                          # (B, S, H)

    # ---- single fused Pallas call: GCN + label-wise attention + transform + reduction ----
    out = bertla_forward(A_norm, gx, gcn_w1, gcn_b1, gcn_w2, gcn_b2,
                         text_feats, w_l, b_l, w_t, b_t, start=start)
    out = jax.block_until_ready(out)

    # ---- plain-JAX reference check (same bf16-operand / f32-accumulate recipe) ----
    bf = lambda z: z.astype(jnp.bfloat16)
    f32 = jnp.float32
    h = jnp.dot(bf(gx), bf(gcn_w1), preferred_element_type=f32)
    h = jnp.dot(bf(A_norm), bf(h), preferred_element_type=f32) + gcn_b1
    h = jax.nn.relu(h)
    h = jnp.dot(bf(h), bf(gcn_w2), preferred_element_type=f32)
    h = jnp.dot(bf(A_norm), bf(h), preferred_element_type=f32) + gcn_b2
    gcn_ref = jax.nn.relu(h)
    initial_graph_feat = gx[start:]                                     # (L, Dlab)
    graph_feat_ref = gcn_ref[start:]                                    # (L, Gout)
    all_graph_feat = jnp.concatenate([initial_graph_feat, graph_feat_ref], axis=-1)

    wref = jnp.tanh(jnp.einsum('bsh,hd->bsd', bf(text_feats), bf(w_l),
                               preferred_element_type=f32) + b_l)       # (B, S, Dlab)
    scores = jnp.einsum('ld,bsd->bls', bf(initial_graph_feat), bf(wref),
                        preferred_element_type=f32)                     # (B, L, S)
    weights = jax.nn.softmax(scores, axis=1)                            # softmax over labels
    attn = jnp.einsum('bls,bsh->blh', bf(weights), bf(text_feats),
                      preferred_element_type=f32)                       # (B, L, H)
    tref = jax.nn.relu(jnp.einsum('blh,hd->bld', bf(attn), bf(w_t),
                                  preferred_element_type=f32) + b_t)    # (B, L, D_out)
    out_ref = jnp.sum(tref * all_graph_feat[None], axis=-1)             # (B, L)

    assert out.shape == (B, L)
    assert jnp.allclose(out, out_ref, rtol=1e-2, atol=1e-2), (
        f"max abs err {jnp.max(jnp.abs(out - out_ref))}")
    print("KERNEL_OK")
</pallas_src>

<mosaic_0001>
module attributes {stable_mosaic.version = 11 : i64} {
  func.func @bertla_fused_kernel(%arg0: memref<12x12xf32, #tpu.memory_space<vmem>>, %arg1: memref<8x12xf32, #tpu.memory_space<vmem>>, %arg2: memref<12x16xf32, #tpu.memory_space<vmem>>, %arg3: memref<8x16xf32, #tpu.memory_space<vmem>>, %arg4: memref<16x16xf32, #tpu.memory_space<vmem>>, %arg5: memref<1x16xf32, #tpu.memory_space<vmem>>, %arg6: memref<16x16xf32, #tpu.memory_space<vmem>>, %arg7: memref<1x16xf32, #tpu.memory_space<vmem>>, %arg8: memref<32x32xf32, #tpu.memory_space<vmem>>, %arg9: memref<32x16xf32, #tpu.memory_space<vmem>>, %arg10: memref<1x16xf32, #tpu.memory_space<vmem>>, %arg11: memref<32x16xf32, #tpu.memory_space<vmem>>, %arg12: memref<1x16xf32, #tpu.memory_space<vmem>>, %arg13: memref<32x16xf32, #tpu.memory_space<vmem>>, %arg14: memref<1x16xf32, #tpu.memory_space<vmem>>, %arg15: memref<2x8xf32, #tpu.memory_space<vmem>>) attributes {dimension_semantics = [], scalar_prefetch = 0 : i64, scratch_operands = 0 : i64, tpu.core_type = #tpu.core_type<tc>} {
    %c0 = arith.constant 0 : index
    %c0_0 = arith.constant 0 : index
    %0 = vector.load %arg2[%c0, %c0_0] : memref<12x16xf32, #tpu.memory_space<vmem>>, vector<12x16xf32>
    %1 = arith.truncf %0 : vector<12x16xf32> to vector<12x16xbf16>
    %c0_1 = arith.constant 0 : index
    %c0_2 = arith.constant 0 : index
    %2 = vector.load %arg4[%c0_1, %c0_2] : memref<16x16xf32, #tpu.memory_space<vmem>>, vector<16x16xf32>
    %3 = arith.truncf %2 : vector<16x16xf32> to vector<16x16xbf16>
    %cst = arith.constant dense<0.000000e+00> : vector<12x16xf32>
    %4 = tpu.matmul %1, %3, %cst {dimension_numbers = #tpu.dot_dimension_numbers<[1], [0], [0], [1], [0, 0, 1, 1], [], []>} : vector<12x16xbf16>, vector<16x16xbf16>, vector<12x16xf32> -> vector<12x16xf32>
    %c0_3 = arith.constant 0 : index
    %c0_4 = arith.constant 0 : index
    %5 = vector.load %arg0[%c0_3, %c0_4] : memref<12x12xf32, #tpu.memory_space<vmem>>, vector<12x12xf32>
    %6 = arith.truncf %5 : vector<12x12xf32> to vector<12x12xbf16>
    %7 = arith.truncf %4 : vector<12x16xf32> to vector<12x16xbf16>
    %cst_5 = arith.constant dense<0.000000e+00> : vector<12x16xf32>
    %8 = tpu.matmul %6, %7, %cst_5 {dimension_numbers = #tpu.dot_dimension_numbers<[1], [0], [0], [1], [0, 0, 1, 1], [], []>} : vector<12x12xbf16>, vector<12x16xbf16>, vector<12x16xf32> -> vector<12x16xf32>
    %c0_6 = arith.constant 0 : index
    %c0_7 = arith.constant 0 : index
    %9 = vector.load %arg5[%c0_6, %c0_7] : memref<1x16xf32, #tpu.memory_space<vmem>>, vector<1x16xf32>
    %10 = vector.broadcast %9 : vector<1x16xf32> to vector<12x16xf32>
    %11 = arith.addf %8, %10 : vector<12x16xf32>
    %cst_8 = arith.constant 0.000000e+00 : f32
    %12 = vector.broadcast %cst_8 : f32 to vector<12x16xf32>
    %13 = arith.maximumf %11, %12 : vector<12x16xf32>
    %14 = arith.truncf %13 : vector<12x16xf32> to vector<12x16xbf16>
    %c0_9 = arith.constant 0 : index
    %c0_10 = arith.constant 0 : index
    %15 = vector.load %arg6[%c0_9, %c0_10] : memref<16x16xf32, #tpu.memory_space<vmem>>, vector<16x16xf32>
    %16 = arith.truncf %15 : vector<16x16xf32> to vector<16x16xbf16>
    %cst_11 = arith.constant dense<0.000000e+00> : vector<12x16xf32>
    %17 = tpu.matmul %14, %16, %cst_11 {dimension_numbers = #tpu.dot_dimension_numbers<[1], [0], [0], [1], [0, 0, 1, 1], [], []>} : vector<12x16xbf16>, vector<16x16xbf16>, vector<12x16xf32> -> vector<12x16xf32>
    %c0_12 = arith.constant 0 : index
    %c0_13 = arith.constant 0 : index
    %18 = vector.load %arg1[%c0_12, %c0_13] : memref<8x12xf32, #tpu.memory_space<vmem>>, vector<8x12xf32>
    %19 = arith.truncf %18 : vector<8x12xf32> to vector<8x12xbf16>
    %20 = arith.truncf %17 : vector<12x16xf32> to vector<12x16xbf16>
    %cst_14 = arith.constant dense<0.000000e+00> : vector<8x16xf32>
    %21 = tpu.matmul %19, %20, %cst_14 {dimension_numbers = #tpu.dot_dimension_numbers<[1], [0], [0], [1], [0, 0, 1, 1], [], []>} : vector<8x12xbf16>, vector<12x16xbf16>, vector<8x16xf32> -> vector<8x16xf32>
    %c0_15 = arith.constant 0 : index
    %c0_16 = arith.constant 0 : index
    %22 = vector.load %arg7[%c0_15, %c0_16] : memref<1x16xf32, #tpu.memory_space<vmem>>, vector<1x16xf32>
    %23 = vector.broadcast %22 : vector<1x16xf32> to vector<8x16xf32>
    %24 = arith.addf %21, %23 : vector<8x16xf32>
    %cst_17 = arith.constant 0.000000e+00 : f32
    %25 = vector.broadcast %cst_17 : f32 to vector<8x16xf32>
    %26 = arith.maximumf %24, %25 : vector<8x16xf32>
    %c0_18 = arith.constant 0 : index
    %c0_19 = arith.constant 0 : index
    %27 = vector.load %arg3[%c0_18, %c0_19] : memref<8x16xf32, #tpu.memory_space<vmem>>, vector<8x16xf32>
    %28 = arith.truncf %27 : vector<8x16xf32> to vector<8x16xbf16>
    %c0_20 = arith.constant 0 : index
    %c0_21 = arith.constant 0 : index
    %29 = vector.load %arg8[%c0_20, %c0_21] : memref<32x32xf32, #tpu.memory_space<vmem>>, vector<32x32xf32>
    %30 = arith.truncf %29 : vector<32x32xf32> to vector<32x32xbf16>
    %c0_22 = arith.constant 0 : index
    %c0_23 = arith.constant 0 : index
    %31 = vector.load %arg9[%c0_22, %c0_23] : memref<32x16xf32, #tpu.memory_space<vmem>>, vector<32x16xf32>
    %32 = arith.truncf %31 : vector<32x16xf32> to vector<32x16xbf16>
    %cst_24 = arith.constant dense<0.000000e+00> : vector<32x16xf32>
    %33 = tpu.matmul %30, %32, %cst_24 {dimension_numbers = #tpu.dot_dimension_numbers<[1], [0], [0], [1], [0, 0, 1, 1], [], []>} : vector<32x32xbf16>, vector<32x16xbf16>, vector<32x16xf32> -> vector<32x16xf32>
    %c0_25 = arith.constant 0 : index
    %c0_26 = arith.constant 0 : index
    %34 = vector.load %arg10[%c0_25, %c0_26] : memref<1x16xf32, #tpu.memory_space<vmem>>, vector<1x16xf32>
    %35 = vector.broadcast %34 : vector<1x16xf32> to vector<32x16xf32>
    %36 = arith.addf %33, %35 : vector<32x16xf32>
    %37 = math.tanh %36 : vector<32x16xf32>
    %c0_27 = arith.constant 0 : index
    %c0_28 = arith.constant 0 : index
    %38 = vector.load %arg11[%c0_27, %c0_28] : memref<32x16xf32, #tpu.memory_space<vmem>>, vector<32x16xf32>
    %39 = arith.truncf %38 : vector<32x16xf32> to vector<32x16xbf16>
    %c0_29 = arith.constant 0 : index
    %c0_30 = arith.constant 0 : index
    %40 = vector.load %arg13[%c0_29, %c0_30] : memref<32x16xf32, #tpu.memory_space<vmem>>, vector<32x16xf32>
    %41 = arith.truncf %40 : vector<32x16xf32> to vector<32x16xbf16>
    %c0_31 = arith.constant 0 : index
    %c0_32 = arith.constant 0 : index
    %42 = vector.load %arg12[%c0_31, %c0_32] : memref<1x16xf32, #tpu.memory_space<vmem>>, vector<1x16xf32>
    %c0_33 = arith.constant 0 : index
    %c0_34 = arith.constant 0 : index
    %43 = vector.load %arg14[%c0_33, %c0_34] : memref<1x16xf32, #tpu.memory_space<vmem>>, vector<1x16xf32>
    %44 = vector.extract_strided_slice %37 {offsets = [0, 0], sizes = [16, 16], strides = [1, 1]} : vector<32x16xf32> to vector<16x16xf32>
    %45 = arith.truncf %44 : vector<16x16xf32> to vector<16x16xbf16>
    %46 = vector.extract_strided_slice %30 {offsets = [0, 0], sizes = [16, 32], strides = [1, 1]} : vector<32x32xbf16> to vector<16x32xbf16>
    %cst_35 = arith.constant dense<0.000000e+00> : vector<8x16xf32>
    %47 = tpu.matmul %28, %45, %cst_35 {dimension_numbers = #tpu.dot_dimension_numbers<[1], [1], [0], [0], [0, 0, 1, 0], [], []>} : vector<8x16xbf16>, vector<16x16xbf16>, vector<8x16xf32> -> vector<8x16xf32>
    %cst_36 = arith.constant dense<0xFF800000> : vector<16xf32>
    %48 = vector.multi_reduction <maximumf>, %47, %cst_36 [0] : vector<8x16xf32> to vector<16xf32>
    %49 = vector.shape_cast %48 : vector<16xf32> to vector<1x16xf32>
    %50 = vector.broadcast %49 : vector<1x16xf32> to vector<8x16xf32>
    %51 = arith.subf %47, %50 : vector<8x16xf32>
    %52 = math.exp %51 : vector<8x16xf32>
    %cst_37 = arith.constant dense<0.000000e+00> : vector<16xf32>
    %53 = vector.multi_reduction <add>, %52, %cst_37 [0] : vector<8x16xf32> to vector<16xf32>
    %54 = vector.shape_cast %53 : vector<16xf32> to vector<1x16xf32>
    %55 = tpu.reciprocal %54 {approx = true} : vector<1x16xf32> -> vector<1x16xf32>
    %56 = vector.broadcast %55 : vector<1x16xf32> to vector<8x16xf32>
    %57 = arith.mulf %52, %56 : vector<8x16xf32>
    %58 = arith.truncf %57 : vector<8x16xf32> to vector<8x16xbf16>
    %cst_38 = arith.constant dense<0.000000e+00> : vector<8x32xf32>
    %59 = tpu.matmul %58, %46, %cst_38 {dimension_numbers = #tpu.dot_dimension_numbers<[1], [0], [0], [1], [0, 0, 1, 1], [], []>} : vector<8x16xbf16>, vector<16x32xbf16>, vector<8x32xf32> -> vector<8x32xf32>
    %60 = arith.truncf %59 : vector<8x32xf32> to vector<8x32xbf16>
    %cst_39 = arith.constant dense<0.000000e+00> : vector<8x16xf32>
    %61 = tpu.matmul %60, %39, %cst_39 {dimension_numbers = #tpu.dot_dimension_numbers<[1], [0], [0], [1], [0, 0, 1, 1], [], []>} : vector<8x32xbf16>, vector<32x16xbf16>, vector<8x16xf32> -> vector<8x16xf32>
    %62 = vector.broadcast %42 : vector<1x16xf32> to vector<8x16xf32>
    %63 = arith.addf %61, %62 : vector<8x16xf32>
    %cst_40 = arith.constant 0.000000e+00 : f32
    %64 = vector.broadcast %cst_40 : f32 to vector<8x16xf32>
    %65 = arith.maximumf %63, %64 : vector<8x16xf32>
    %cst_41 = arith.constant dense<0.000000e+00> : vector<8x16xf32>
    %66 = tpu.matmul %60, %41, %cst_41 {dimension_numbers = #tpu.dot_dimension_numbers<[1], [0], [0], [1], [0, 0, 1, 1], [], []>} : vector<8x32xbf16>, vector<32x16xbf16>, vector<8x16xf32> -> vector<8x16xf32>
    %67 = vector.broadcast %43 : vector<1x16xf32> to vector<8x16xf32>
    %68 = arith.addf %66, %67 : vector<8x16xf32>
    %cst_42 = arith.constant 0.000000e+00 : f32
    %69 = vector.broadcast %cst_42 : f32 to vector<8x16xf32>
    %70 = arith.maximumf %68, %69 : vector<8x16xf32>
    %71 = arith.mulf %65, %27 : vector<8x16xf32>
    %cst_43 = arith.constant dense<0.000000e+00> : vector<8xf32>
    %72 = vector.multi_reduction <add>, %71, %cst_43 [1] : vector<8x16xf32> to vector<8xf32>
    %73 = arith.mulf %70, %26 : vector<8x16xf32>
    %cst_44 = arith.constant dense<0.000000e+00> : vector<8xf32>
    %74 = vector.multi_reduction <add>, %73, %cst_44 [1] : vector<8x16xf32> to vector<8xf32>
    %75 = arith.addf %72, %74 : vector<8xf32>
    %76 = vector.shape_cast %75 : vector<8xf32> to vector<1x8xf32>
    %77 = vector.extract_strided_slice %37 {offsets = [16, 0], sizes = [16, 16], strides = [1, 1]} : vector<32x16xf32> to vector<16x16xf32>
    %78 = arith.truncf %77 : vector<16x16xf32> to vector<16x16xbf16>
    %79 = vector.extract_strided_slice %30 {offsets = [16, 0], sizes = [16, 32], strides = [1, 1]} : vector<32x32xbf16> to vector<16x32xbf16>
    %cst_45 = arith.constant dense<0.000000e+00> : vector<8x16xf32>
    %80 = tpu.matmul %28, %78, %cst_45 {dimension_numbers = #tpu.dot_dimension_numbers<[1], [1], [0], [0], [0, 0, 1, 0], [], []>} : vector<8x16xbf16>, vector<16x16xbf16>, vector<8x16xf32> -> vector<8x16xf32>
    %cst_46 = arith.constant dense<0xFF800000> : vector<16xf32>
    %81 = vector.multi_reduction <maximumf>, %80, %cst_46 [0] : vector<8x16xf32> to vector<16xf32>
    %82 = vector.shape_cast %81 : vector<16xf32> to vector<1x16xf32>
    %83 = vector.broadcast %82 : vector<1x16xf32> to vector<8x16xf32>
    %84 = arith.subf %80, %83 : vector<8x16xf32>
    %85 = math.exp %84 : vector<8x16xf32>
    %cst_47 = arith.constant dense<0.000000e+00> : vector<16xf32>
    %86 = vector.multi_reduction <add>, %85, %cst_47 [0] : vector<8x16xf32> to vector<16xf32>
    %87 = vector.shape_cast %86 : vector<16xf32> to vector<1x16xf32>
    %88 = tpu.reciprocal %87 {approx = true} : vector<1x16xf32> -> vector<1x16xf32>
    %89 = vector.broadcast %88 : vector<1x16xf32> to vector<8x16xf32>
    %90 = arith.mulf %85, %89 : vector<8x16xf32>
    %91 = arith.truncf %90 : vector<8x16xf32> to vector<8x16xbf16>
    %cst_48 = arith.constant dense<0.000000e+00> : vector<8x32xf32>
    %92 = tpu.matmul %91, %79, %cst_48 {dimension_numbers = #tpu.dot_dimension_numbers<[1], [0], [0], [1], [0, 0, 1, 1], [], []>} : vector<8x16xbf16>, vector<16x32xbf16>, vector<8x32xf32> -> vector<8x32xf32>
    %93 = arith.truncf %92 : vector<8x32xf32> to vector<8x32xbf16>
    %cst_49 = arith.constant dense<0.000000e+00> : vector<8x16xf32>
    %94 = tpu.matmul %93, %39, %cst_49 {dimension_numbers = #tpu.dot_dimension_numbers<[1], [0], [0], [1], [0, 0, 1, 1], [], []>} : vector<8x32xbf16>, vector<32x16xbf16>, vector<8x16xf32> -> vector<8x16xf32>
    %95 = vector.broadcast %42 : vector<1x16xf32> to vector<8x16xf32>
    %96 = arith.addf %94, %95 : vector<8x16xf32>
    %cst_50 = arith.constant 0.000000e+00 : f32
    %97 = vector.broadcast %cst_50 : f32 to vector<8x16xf32>
    %98 = arith.maximumf %96, %97 : vector<8x16xf32>
    %cst_51 = arith.constant dense<0.000000e+00> : vector<8x16xf32>
    %99 = tpu.matmul %93, %41, %cst_51 {dimension_numbers = #tpu.dot_dimension_numbers<[1], [0], [0], [1], [0, 0, 1, 1], [], []>} : vector<8x32xbf16>, vector<32x16xbf16>, vector<8x16xf32> -> vector<8x16xf32>
    %100 = vector.broadcast %43 : vector<1x16xf32> to vector<8x16xf32>
    %101 = arith.addf %99, %100 : vector<8x16xf32>
    %cst_52 = arith.constant 0.000000e+00 : f32
    %102 = vector.broadcast %cst_52 : f32 to vector<8x16xf32>
    %103 = arith.maximumf %101, %102 : vector<8x16xf32>
    %104 = arith.mulf %98, %27 : vector<8x16xf32>
    %cst_53 = arith.constant dense<0.000000e+00> : vector<8xf32>
    %105 = vector.multi_reduction <add>, %104, %cst_53 [1] : vector<8x16xf32> to vector<8xf32>
    %106 = arith.mulf %103, %26 : vector<8x16xf32>
    %cst_54 = arith.constant dense<0.000000e+00> : vector<8xf32>
    %107 = vector.multi_reduction <add>, %106, %cst_54 [1] : vector<8x16xf32> to vector<8xf32>
    %108 = arith.addf %105, %107 : vector<8xf32>
    %109 = vector.shape_cast %108 : vector<8xf32> to vector<1x8xf32>
    %110 = tpu.concatenate %76, %109 in 0 : vector<1x8xf32>, vector<1x8xf32> -> vector<2x8xf32>
    %c0_55 = arith.constant 0 : index
    %c0_56 = arith.constant 0 : index
    %111 = vector.load %arg15[%c0_55, %c0_56] : memref<2x8xf32, #tpu.memory_space<vmem>>, vector<2x8xf32>
    tpu.vector_store %arg15[%c0_55, %c0_56], %110 {strides = array<i32>} : memref<2x8xf32, #tpu.memory_space<vmem>>, vector<2x8xf32>,
    return
  }
}

</mosaic_0001>

<bundles_post_ra>
// kernel: tpu_custom_call.1
= control target key start
LH: loop header
LB: loop body
LE: loop exit
PB: predicated region body
PF: predicated region fallthrough
CT: control target
= control target key end

     0   :  { %v998_v3 = vmov 0.0   ;;  %vm999_vm0 = vmmov 0   ;;  %s1297_s0 = inlined_call_operand.vmem [shape: f32[12,12], index: 0, kind: input, shape index: {}]   ;;  %s1298_s1 = inlined_call_operand.vmem [shape: f32[8,12], index: 1, kind: input, shape index: {}]   ;;  %s1299_s2 = inlined_call_operand.vmem [shape: f32[12,16], index: 2, kind: input, shape index: {}]   ;;  %s1300_s3 = inlined_call_operand.vmem [shape: f32[8,16], index: 3, kind: input, shape index: {}]   ;;  %s1301_s4 = inlined_call_operand.vmem [shape: f32[16,16], index: 4, kind: input, shape index: {}]   ;;  %s1302_s5 = inlined_call_operand.vmem [shape: f32[1,16], index: 5, kind: input, shape index: {}]   ;;  %s1303_s6 = inlined_call_operand.vmem [shape: f32[16,16], index: 6, kind: input, shape index: {}]   ;;  %s1304_s7 = inlined_call_operand.vmem [shape: f32[1,16], index: 7, kind: input, shape index: {}]   ;;  %s1305_s8 = inlined_call_operand.vmem [shape: f32[32,32], index: 8, kind: input, shape index: {}]   ;;  %s1306_s9 = inlined_call_operand.vmem [shape: f32[32,16], index: 9, kind: input, shape index: {}]   ;;  %s1307_s10 = inlined_call_operand.vmem [shape: f32[1,16], index: 10, kind: input, shape index: {}]   ;;  %s1308_s11 = inlined_call_operand.vmem [shape: f32[32,16], index: 11, kind: input, shape index: {}]   ;;  %s1309_s12 = inlined_call_operand.vmem [shape: f32[1,16], index: 12, kind: input, shape index: {}]   ;;  %s1310_s13 = inlined_call_operand.vmem [shape: f32[32,16], index: 13, kind: input, shape index: {}]   ;;  %s1311_s14 = inlined_call_operand.vmem [shape: f32[1,16], index: 14, kind: input, shape index: {}]   ;;  %s1312_s15 = inlined_call_operand.hbm [shape: f32[2,8], index: 15, kind: output, shape index: {}]  }
   0x1   :  { %v55_v0 = vld [vmem:[%s1301_s4] sm:$0xff]  ;;  %v56_v1 = vld [vmem:[%s1301_s4 + $0x8] sm:$0xff]  ;;  %867 = vmatprep.subr.bf16.mxu0 %v998_v3  ;;  %869 = vmatprep.mubr.msk.bf16.mxu0 %vm999_vm0, %v998_v3 }
   0x2   :  { %v52_v2 = vld [vmem:[%s1299_s2] sm:$0xff]  ;;  %v57_v4 = vpack.c.bf16 %v56_v1, %v55_v0  ;;  %v53_v5 = vld [vmem:[%s1299_s2 + $0x8] sm:$0xf] }
   0x3   :  { %20 = vsyncpa [#allocation3], 0  ;;  %v54_v6 = vpack.c.bf16 %v53_v5, %v52_v2  ;;  %873 = vmatprep.subr.bf16.mxu1 %v998_v3  ;;  %875 = vmatprep.mubr.msk.bf16.mxu1 %vm999_vm0, %v998_v3  ;;  %vm58_vm1 = vcmask 130048   ;;  %vm118_vm2 = vcmask 1045504   ;;  %v103_v10 = vld [vmem:[%s1297_s0] sm:$0xff]  ;;  %vm114_vm3 = vcmask 97280  }
   0x4   :  { %868 = vmatpush3.bf16.msra.mxu0 %v57_v4  ;;  %v104_v11 = vld [vmem:[%s1297_s0 + $0x8] sm:$0xf]  ;;  %v166_v16 = vld [vmem:[%s1303_s6] sm:$0xff]  ;;  %v280_v31 = vld [vmem:[%s1306_s9 + $0x10] sm:$0xff]  ;;  %vm291_vm4 = vcmask 261120   ;;  %vm798_vm5 = vcmask 1040384  }
   0x5   :  { %879 = vmatprep.subr.bf16.mxu0 %v998_v3  ;;  %v105_v15 = vpack.c.bf16 %v104_v11, %v103_v10  ;;  %v167_v17 = vld [vmem:[%s1303_s6 + $0x8] sm:$0xff]  ;;  %v278_v19 = vld [vmem:[%s1306_s9] sm:$0xff]  ;;  %v281_v32 = vld [vmem:[%s1306_s9 + $0x18] sm:$0xff]  ;;  %vm800_vm6 = vcmask 58368  }
   0x6   :  { %v168_v18 = vpack.c.bf16 %v167_v17, %v166_v16  ;;  %v279_v20 = vld [vmem:[%s1306_s9 + $0x8] sm:$0xff]  ;;  %v817_v22 = vld [vmem:[%s1302_s5] ss:$0 sm:$0xff]  ;;  %v283_v37 = vpack.c.bf16 %v281_v32, %v280_v31  ;;  %v274_v38 = vld [vmem:[%s1305_s8 + $0x10] sm:$0xff] }
   0x7   :  { %870 = vmatmul.mubr.msk.bf16.vlgmr.msra.gmra.mrb[0].mxu0 %vm58_vm1, %v54_v6  ;;  %v282_v21 = vpack.c.bf16 %v279_v20, %v278_v19  ;;  %v272_v29 = vld [vmem:[%s1305_s8] sm:$0xff]  ;;  %v273_v30 = vld [vmem:[%s1305_s8 + $0x8] sm:$0xff]  ;;  %v275_v39 = vld [vmem:[%s1305_s8 + $0x18] sm:$0xff] }
   0x8   :  { %881 = vmatprep.mubr.msk.bf16.mxu0 %vm999_vm0, %v998_v3  ;;  %880 = vmatpush3.bf16.msra.mxu0 %v168_v18  ;;  %v276_v35 = vpack.c.bf16 %v273_v30, %v272_v29  ;;  %v1149_v40 = vpack.c.bf16 %v275_v39, %v274_v38  ;;  %v213_v44 = vld [vmem:[%s1298_s1] sm:$0xff]  ;;  %v352_v5 = vld [vmem:[%s1308_s11 + $0x8] sm:$0xff]  ;;  %v353_v6 = vld [vmem:[%s1308_s11 + $0x10] sm:$0xff] }
   0x9   :  { %891 = vmatprep.subr.bf16.mxu0 %v282_v21  ;;  %v214_v48 = vpack.c.bf16 %v213_v44, %v213_v44  ;;  %v822_v49 = vld [vmem:[%s1307_s10] ss:$0 sm:$0xff] }
   0xa   :  { %v1178_v1 = vld [vmem:[%s1300_s3] sm:$0xff] }
   0xb   :  { %v1183_v2 = vpack.c.bf16 %v1178_v1, %v1178_v1  ;;  %v351_v4 = vld [vmem:[%s1308_s11] sm:$0xff] }
  0xda   :  { %v96_v7 = vpop.f32.mrb[0].mxu0 }
  0xdb   :  { %v871_v8 = vpop.f32.mrb[1].mxu0 }
  0xdc   :  { %v99_v9 = vpop.f32.mrb[2].mxu0  ;;  %v354_v8 = vld [vmem:[%s1308_s11 + $0x18] sm:$0xff] }
  0xdd   :  { %v106_v12 = vpack.c.bf16 %v99_v9, %v96_v7  ;;  %v872_v13 = vpop.f32.mrb[3].mxu0  ;;  %v1198_v7 = vpack.c.bf16 %v352_v5, %v351_v4  ;;  %v1204_v9 = vpack.c.bf16 %v354_v8, %v353_v6 }
  0xdf   :  { %v120_v14 = vsel %vm118_vm2, %v106_v12, 0 }
  0xe0   :  { %874 = vmatpush3.bf16.msra.mxu1 %v120_v14 }
  0xe1   :  { %885 = vmatprep.subr.bf16.mxu1 %v998_v3 }
  0xe3   :  { %876 = vmatmul.mubr.msk.bf16.vlgmr.msra.gmra.mrb[0].mxu1 %vm114_vm3, %v105_v15 }
  0xe4   :  { %887 = vmatprep.mubr.msk.bf16.mxu1 %vm999_vm0, %v998_v3 }
 0x1b6   :  { %v156_v23 = vpop.f32.mrb[0].mxu1 }
 0x1b7   :  { %v157_v24 = vadd.f32 %v817_v22, %v156_v23  ;;  %v877_v25 = vpop.f32.mrb[1].mxu1 }
 0x1b8   :  { %v159_v26 = vpop.f32.mrb[2].mxu1 }
 0x1b9   :  { %v160_v27 = vadd.f32 %v817_v22, %v159_v26  ;;  %v878_v28 = vpop.f32.mrb[3].mxu1  ;;  %v163_v33 = vmax.f32 %v157_v24, 0.0 }
 0x1bb   :  { %v164_v34 = vmax.f32 %v160_v27, 0.0 }
 0x1bd   :  { %v165_v36 = vpack.c.bf16 %v164_v34, %v163_v33 }
 0x1bf   :  { %882 = vmatmul.mubr.msk.bf16.vlgmr.msra.gmra.mrb[4].mxu0 %vm58_vm1, %v165_v36  ;;  %v358_v36 = vld [vmem:[%s1310_s13 + $0x8] sm:$0xff] }
 0x1c0   :  { %892 = vmatpush3.bf16.msra.mxu0 %v282_v21  ;;  %895 = vmatprep.mubr.msk.bf16.mxu0 %vm291_vm4, %v276_v35 }
 0x1c1   :  { %893 = vmatprep.subr.bf16.mxu0 %v283_v37 }
 0x1c4   :  { %894 = vmatpush3.bf16.msra.mxu0 %v283_v37 }
 0x1c5   :  { %905 = vmatprep.subr.bf16.mxu0 %v998_v3 }
 0x1c7   :  { %896 = vmatmul.mubr.msk.bf16.vlgmr.msra.gmra.mrb[8].mxu0 %vm291_vm4, %v1149_v40 }
 0x1c8   :  { %906 = vmatpush3.bf16.msra.mxu0 %v276_v35  ;;  %907 = vmatprep.mubr.msk.bf16.mxu0 %vm999_vm0, %v998_v3  ;;  %v357_v35 = vld [vmem:[%s1310_s13] sm:$0xff] }
 0x1c9   :  { %919 = vmatprep.subr.bf16.mxu0 %v998_v3  ;;  %v1219_v39 = vpack.c.bf16 %v358_v36, %v357_v35 }
 0x292   :  { %v206_v41 = vpop.f32.mrb[4].mxu0 }
 0x293   :  { %v883_v42 = vpop.f32.mrb[5].mxu0 }
 0x294   :  { %v209_v43 = vpop.f32.mrb[6].mxu0  ;;  %v359_v42 = vld [vmem:[%s1310_s13 + $0x10] sm:$0xff] }
 0x295   :  { %v215_v45 = vpack.c.bf16 %v209_v43, %v206_v41  ;;  %v884_v46 = vpop.f32.mrb[7].mxu0  ;;  %v360_v43 = vld [vmem:[%s1310_s13 + $0x18] sm:$0xff] }
 0x296   :  { %v1232_v44 = vpack.c.bf16 %v360_v43, %v359_v42 }
 0x297   :  { %v227_v47 = vsel %vm118_vm2, %v215_v45, 0 }
 0x298   :  { %886 = vmatpush3.bf16.msra.mxu1 %v227_v47 }
 0x299   :  { %899 = vmatprep.subr.bf16.mxu1 %v998_v3 }
 0x29a   :  { %v897_v50 = vpop.f32.mrb[8].mxu0 }
 0x29b   :  { %v341_v51 = vadd.f32 %v897_v50, %v822_v49  ;;  %v332_v52 = vpop.f32.mrb[9].mxu0  ;;  %888 = vmatmul.mubr.msk.bf16.vlgmr.msra.gmra.mrb[4].mxu1 %vm114_vm3, %v214_v48 }
 0x29c   :  { %v333_v53 = vadd.f32 %v822_v49, %v332_v52  ;;  %v898_v54 = vpop.f32.mrb[10].mxu0  ;;  %901 = vmatprep.mubr.msk.bf16.mxu1 %vm999_vm0, %v998_v3  ;;  %v829_v52 = vld [vmem:[%s1311_s14] ss:$0 sm:$0xff] }
 0x29d   :  { %958 = vtanh.f32 %v341_v51  ;;  %v344_v55 = vadd.f32 %v898_v54, %v822_v49  ;;  %v335_v56 = vpop.f32.mrb[11].mxu0  ;;  %v827_v51 = vld [vmem:[%s1309_s12] ss:$0 sm:$0xff] }
 0x29e   :  { %960 = vtanh.f32 %v333_v53  ;;  %v336_v57 = vadd.f32 %v822_v49, %v335_v56 }
 0x29f   :  { %962 = vtanh.f32 %v344_v55 }
 0x2a0   :  { %964 = vtanh.f32 %v336_v57 }
 0x2a7   :  { %v1168_v58 = vpop.eup %958 }
 0x2a8   :  { %v961_v59 = vpop.eup %960 }
 0x2a9   :  { %v1170_v60 = vpop.eup %962 }
 0x2aa   :  { %v965_v61 = vpop.eup %964  ;;  %v582_v62 = vpack.c.bf16 %v1170_v60, %v1168_v58 }
 0x2ab   :  { %v365_v63 = vpack.c.bf16 %v965_v61, %v961_v59 }
 0x2ac   :  { %v584_v50 = vsel %vm58_vm1, %v582_v62, 0 }
 0x2ad   :  { %v370_v0 = vsel %vm58_vm1, %v365_v63, 0 }
 0x2ae   :  { %900 = vmatpush3.bf16.xpose.msra.mxu1 %v370_v0 }
 0x2af   :  { %911 = vmatprep.subr.bf16.mxu1 %v998_v3 }
 0x2b5   :  { %902 = vmatmul.mubr.msk.bf16.vlgmr.msra.gmra.mrb[8].mxu1 %vm58_vm1, %v1183_v2 }
 0x2b6   :  { %915 = vmatprep.mubr.msk.bf16.mxu1 %vm999_vm0, %v998_v3  ;;  %912 = vmatpush3.bf16.msra.mxu1 %v1198_v7 }
 0x2b7   :  { %913 = vmatprep.subr.bf16.mxu1 %v998_v3 }
 0x2ba   :  { %914 = vmatpush3.bf16.msra.mxu1 %v1204_v9 }
 0x2bb   :  { %927 = vmatprep.subr.bf16.mxu1 %v998_v3 }
 0x36e   :  { %v1209_v10 = vpop.f32.mrb[4].mxu1 }
 0x36f   :  { %v889_v11 = vpop.f32.mrb[5].mxu1 }
 0x370   :  { %v266_v12 = vpop.f32.mrb[6].mxu1 }
 0x371   :  { %v890_v13 = vpop.f32.mrb[7].mxu1 }
 0x388   :  { %v406_v14 = vpop.f32.mrb[8].mxu1 }
 0x389   :  { %v412_v15 = vsel %vm58_vm1, %v406_v14, -inf  ;;  %v903_v16 = vpop.f32.mrb[9].mxu1 }
 0x38a   :  { %v413_v17 = vrot.slane %v412_v15, 4  ;;  %v409_v18 = vpop.f32.mrb[10].mxu1 }
 0x38b   :  { %v904_v19 = vpop.f32.mrb[11].mxu1 }
 0x38c   :  { %v414_v20 = vmax.f32 %v412_v15, %v413_v17 }
 0x38e   :  { %v415_v21 = vrot.slane %v414_v20, 2 }
 0x390   :  { %v416_v22 = vmax.f32 %v414_v20, %v415_v21 }
 0x392   :  { %v417_v23 = vrot.slane %v416_v22, 1 }
 0x394   :  { %v418_v24 = vmax.f32 %v416_v22, %v417_v23 }
 0x396   :  { %v419_v25 = vsub.f32 %v406_v14, %v418_v24 }
 0x398   :  { %v420_v26 = vmul.f32 1.442695, %v419_v25 }
 0x39a   :  { %966 = vpow2.f32 %v420_v26 }
 0x3a4   :  { %v967_v27 = vpop.eup %966 }
 0x3a5   :  { %v422_v28 = vsel %vm58_vm1, %v967_v27, 0.0 }
 0x3a6   :  { %v423_v29 = vrot.slane %v422_v28, 4 }
 0x3a8   :  { %v424_v30 = vadd.f32 %v423_v29, %v422_v28 }
 0x3aa   :  { %v425_v31 = vrot.slane %v424_v30, 2 }
 0x3ac   :  { %v426_v32 = vadd.f32 %v425_v31, %v424_v30 }
 0x3ae   :  { %v427_v33 = vrot.slane %v426_v32, 1 }
 0x3b0   :  { %v428_v34 = vadd.f32 %v427_v33, %v426_v32 }
 0x3b2   :  { %968 = vrcp.f32 %v428_v34 }
 0x3bc   :  { %v969_v37 = vpop.eup %968 }
 0x3bd   :  { %v430_v38 = vmul.f32 %v969_v37, %v967_v27 }
 0x3bf   :  { %v431_v41 = vpack.c.bf16 %v430_v38, %v430_v38 }
 0x3c1   :  { %908 = vmatmul.mubr.msk.bf16.vlgmr.msra.gmra.mrb[12].mxu0 %vm58_vm1, %v431_v41 }
 0x3c2   :  { %920 = vmatpush3.bf16.msra.mxu0 %v1219_v39  ;;  %923 = vmatprep.mubr.msk.bf16.mxu0 %vm999_vm0, %v998_v3 }
 0x3c3   :  { %921 = vmatprep.subr.bf16.mxu0 %v998_v3 }
 0x3c6   :  { %922 = vmatpush3.bf16.msra.mxu0 %v1232_v44 }
 0x3c7   :  { %933 = vmatprep.subr.bf16.mxu0 %v998_v3 }
 0x494   :  { %v469_v45 = vpop.f32.mrb[12].mxu0 }
 0x495   :  { %v475_v46 = vpack.c.bf16 %v469_v45, %v469_v45  ;;  %v909_v47 = vpop.f32.mrb[13].mxu0 }
 0x496   :  { %v472_v48 = vpop.f32.mrb[14].mxu0 }
 0x497   :  { %v910_v49 = vpop.f32.mrb[15].mxu0  ;;  %916 = vmatmul.mubr.msk.bf16.vlgmr.msra.gmra.mrb[12].mxu1 %vm291_vm4, %v475_v46  ;;  %924 = vmatmul.mubr.msk.bf16.vlgmr.msra.gmra.mrb[16].mxu0 %vm291_vm4, %v475_v46 }
 0x498   :  { %928 = vmatpush3.bf16.xpose.msra.mxu1 %v584_v50  ;;  %929 = vmatprep.mubr.msk.bf16.mxu1 %vm999_vm0, %v998_v3 }
 0x499   :  { %934 = vmatpush3.bf16.msra.mxu0 %v1149_v40  ;;  %935 = vmatprep.mubr.msk.bf16.mxu0 %vm999_vm0, %v998_v3  ;;  %v820_v40 = vld [vmem:[%s1304_s7] ss:$0 sm:$0xff]  ;;  %s1000_s7 = smov [#allocation2]  }
 0x49a   :  { %939 = vmatprep.subr.bf16.mxu1 %v998_v3  ;;  %947 = vmatprep.subr.bf16.mxu0 %v998_v3  ;;  %v1266_v55 = vadd.f32 %v820_v40, %v1209_v10  ;;  %s808_s12 = sshll.u32 %s1000_s7, 4  ;;  %s809_s12 = int_to_ptr.vmem [resolvable:$true] %s808_s12 }
 0x49b   :  { %s974_s14 = scalar_lea.vmem %s809_s12, 32  ;;  %p979_p1 = scmp.lt.s32.totalorder %s809_s12, %s809_s12 }
 0x49c   :  { %v269_v4 = vmax.f32 %v1266_v55, 0.0  ;;  %p975_p0 = scmp.ne.s32.totalorder %s809_s12, %s974_s14  ;;  %p980_p2 = scmp.lt.s32.totalorder %s974_s14, %s974_s14 }
 0x49e   :  { %p981_p3 = por %p980_p2, %p979_p1 }
 0x49f   :  { %930 = vmatmul.mubr.msk.bf16.vlgmr.msra.gmra.mrb[16].mxu1 %vm58_vm1, %v1183_v2 }
 0x4a0   :  { %940 = vmatpush3.bf16.msra.mxu1 %v1198_v7  ;;  %943 = vmatprep.mubr.msk.bf16.mxu1 %vm999_vm0, %v998_v3  ;;  %p982_p4 = pnand %p981_p3, %p975_p0 }
 0x4a1   :  { %941 = vmatprep.subr.bf16.mxu1 %v998_v3 }
 0x4a4   :  { %942 = vmatpush3.bf16.msra.mxu1 %v1204_v9 }
 0x56a   :  { %v519_v53 = vpop.f32.mrb[12].mxu1  ;;  %v566_v54 = vpop.f32.mrb[16].mxu0 }
 0x56b   :  { %v520_v56 = vadd.f32 %v827_v51, %v519_v53  ;;  %v567_v57 = vadd.f32 %v829_v52, %v566_v54  ;;  %v917_v58 = vpop.f32.mrb[13].mxu1  ;;  %v925_v59 = vpop.f32.mrb[17].mxu0 }
 0x56c   :  { %v522_v60 = vpop.f32.mrb[14].mxu1  ;;  %v569_v61 = vpop.f32.mrb[18].mxu0 }
 0x56d   :  { %v525_v62 = vmax.f32 %v520_v56, 0.0  ;;  %v572_v63 = vmax.f32 %v567_v57, 0.0  ;;  %v918_v0 = vpop.f32.mrb[15].mxu1  ;;  %v926_v2 = vpop.f32.mrb[19].mxu0 }
 0x56f   :  { %v573_v5 = vmul.f32 %v525_v62, %v1178_v1  ;;  %v577_v7 = vmul.f32 %v572_v63, %v269_v4 }
 0x571   :  { %v574_v6 = vsel %vm58_vm1, %v573_v5, 0.0  ;;  %v578_v14 = vsel %vm58_vm1, %v577_v7, 0.0 }
 0x572   :  { %575 = vadd.xlane.f32.xlu0 %v574_v6  ;;  %v620_v8 = vpop.f32.mrb[16].mxu1 }
 0x573   :  { %v626_v9 = vsel %vm58_vm1, %v620_v8, -inf  ;;  %v931_v10 = vpop.f32.mrb[17].mxu1 }
 0x574   :  { %v627_v11 = vrot.slane %v626_v9, 4  ;;  %v623_v12 = vpop.f32.mrb[18].mxu1 }
 0x575   :  { %v932_v13 = vpop.f32.mrb[19].mxu1 }
 0x576   :  { %v628_v15 = vmax.f32 %v626_v9, %v627_v11  ;;  %579 = vadd.xlane.f32.xlu0 %v578_v14 }
 0x578   :  { %v629_v16 = vrot.slane %v628_v15, 2 }
 0x57a   :  { %v630_v17 = vmax.f32 %v628_v15, %v629_v16 }
 0x57c   :  { %v631_v18 = vrot.slane %v630_v17, 1 }
 0x57e   :  { %v632_v19 = vmax.f32 %v630_v17, %v631_v18 }
 0x580   :  { %v633_v20 = vsub.f32 %v620_v8, %v632_v19 }
 0x582   :  { %v634_v21 = vmul.f32 1.442695, %v633_v20 }
 0x584   :  { %970 = vpow2.f32 %v634_v21 }
 0x58e   :  { %v971_v22 = vpop.eup %970 }
 0x58f   :  { %v636_v23 = vsel %vm58_vm1, %v971_v22, 0.0 }
 0x590   :  { %v637_v24 = vrot.slane %v636_v23, 4 }
 0x592   :  { %v638_v25 = vadd.f32 %v637_v24, %v636_v23 }
 0x594   :  { %v639_v26 = vrot.slane %v638_v25, 2 }
 0x596   :  { %v640_v27 = vadd.f32 %v639_v26, %v638_v25 }
 0x598   :  { %v641_v28 = vrot.slane %v640_v27, 1 }
 0x59a   :  { %v642_v29 = vadd.f32 %v641_v28, %v640_v27 }
 0x59c   :  { %972 = vrcp.f32 %v642_v29 }
 0x5a6   :  { %v973_v30 = vpop.eup %972 }
 0x5a7   :  { %v644_v31 = vmul.f32 %v973_v30, %v971_v22 }
 0x5a9   :  { %v645_v32 = vpack.c.bf16 %v644_v31, %v644_v31 }
 0x5ab   :  { %936 = vmatmul.mubr.msk.bf16.vlgmr.msra.gmra.mrb[20].mxu0 %vm58_vm1, %v645_v32 }
 0x5ac   :  { %948 = vmatpush3.bf16.msra.mxu0 %v1219_v39  ;;  %951 = vmatprep.mubr.msk.bf16.mxu0 %vm999_vm0, %v998_v3 }
 0x5ad   :  { %949 = vmatprep.subr.bf16.mxu0 %v998_v3 }
 0x5b0   :  { %950 = vmatpush3.bf16.msra.mxu0 %v1232_v44 }
 0x5ff   :  { %v576_v55 = vpop.xlane.xlu0 %575 }
 0x603   :  { %v580_v57 = vpop.xlane.xlu0 %579 }
 0x604   :  { %v581_v60 = vadd.f32 %v580_v57, %v576_v55 }
 0x67e   :  { %v683_v33 = vpop.f32.mrb[20].mxu0 }
 0x67f   :  { %v689_v34 = vpack.c.bf16 %v683_v33, %v683_v33  ;;  %v937_v35 = vpop.f32.mrb[21].mxu0 }
 0x680   :  { %v686_v36 = vpop.f32.mrb[22].mxu0 }
 0x681   :  { %v938_v37 = vpop.f32.mrb[23].mxu0  ;;  %944 = vmatmul.mubr.msk.bf16.vlgmr.msra.gmra.mrb[20].mxu1 %vm291_vm4, %v689_v34  ;;  %952 = vmatmul.mubr.msk.bf16.vlgmr.msra.gmra.mrb[24].mxu0 %vm291_vm4, %v689_v34 }
 0x754   :  { %v727_v38 = vpop.f32.mrb[20].mxu1  ;;  %v768_v41 = vpop.f32.mrb[24].mxu0 }
 0x755   :  { %v728_v42 = vadd.f32 %v827_v51, %v727_v38  ;;  %v769_v39 = vadd.f32 %v829_v52, %v768_v41  ;;  %v945_v43 = vpop.f32.mrb[21].mxu1  ;;  %v953_v45 = vpop.f32.mrb[25].mxu0  ;;  %v785_v51 = vlaneseq }
 0x756   :  { %v730_v46 = vpop.f32.mrb[22].mxu1  ;;  %v771_v47 = vpop.f32.mrb[26].mxu0 }
 0x757   :  { %v733_v3 = vmax.f32 %v728_v42, 0.0  ;;  %v774_v48 = vmax.f32 %v769_v39, 0.0  ;;  %v946_v44 = vpop.f32.mrb[23].mxu1  ;;  %v954_v49 = vpop.f32.mrb[27].mxu0  ;;  %v786_v52 = vand.u32 127, %v785_v51  ;;  %v788_v56 = vshrl.u32 %v785_v51, 7 }
 0x759   :  { %v775_v50 = vmul.f32 %v733_v3, %v1178_v1  ;;  %v779_v53 = vmul.f32 %v774_v48, %v269_v4  ;;  %v789_v59 = vsub.s32 %v786_v52, %v788_v56 }
 0x75b   :  { %v776_v40 = vsel %vm58_vm1, %v775_v50, 0.0  ;;  %v780_v54 = vsel %vm58_vm1, %v779_v53, 0.0  ;;  %v790_v1 = vrot.slane %v581_v60, %v789_v59 }
 0x75c   :  { %777 = vadd.xlane.f32.xlu1 %v776_v40 }
 0x760   :  { %781 = vadd.xlane.f32.xlu1 %v780_v54 }
 0x7e9   :  { %v778_v58 = vpop.xlane.xlu1 %777 }
 0x7ed   :  { %v782_v61 = vpop.xlane.xlu1 %781 }
 0x7ee   :  { %v783_v62 = vadd.f32 %v782_v61, %v778_v58 }
 0x7f0   :  { %v796_v63 = vrot.slane %v783_v62, %v789_v59 }
 0x7f2   :  { %v799_v0 = vsel %vm798_vm5, %v790_v1, %v796_v63 }
 0x7f3   :  { %801 = vst.msk [vmem:[#allocation2] sm:$0x3] %vm800_vm6, %v799_v0 }
 0x7f4   :  { %985 = shalt.err (!%p982_p4)
}
 0x7f5   :  { %s986_s0 = scalar_lea.hbm %s1312_s15, 32 }
 0x7f6   :  { %p987_p5 = scmp.ne.s32.totalorder %s1312_s15, %s986_s0  ;;  %p990_p6 = scmp.lt.u32.totalorder %s986_s0, %s1312_s15 }
 0x7f8   :  { %p992_p7 = pnand %p990_p6, %p987_p5 }
 0x7fa   :  { %995 = shalt.err (!%p992_p7)
}
 0x7fb   :  { %811 = dma.vmem_to_hbm [thread:$0]  %s809_s12, 32, %s1312_s15, [#allocation3]  }
 0x7fc   :  { %996 = dma.done.wait [#allocation3], 32  }
 0x7fd   :  { %997 = vsyncadd [#allocation3], 4294967264 }
 0x7fe   :  { %815 = vsyncpa [#allocation3], 1 }

</bundles_post_ra>
